<compile_context>
chip_gen: v5e
topology: v5e:2x2
jax: 0.10.0
libtpu: 0.0.40
codegen_flags: <defaults>
</compile_context>

<pallas_src>
import jax
import jax.numpy as jnp
from jax.experimental import pallas as pl
from jax.experimental.pallas import tpu as pltpu


def _qkv_fused_kernel(x_ref, wdw_ref, bdw_ref, wpw_ref, bpw_ref, out_ref):
    # x_ref:   (1, n_total + K - 1, C)  padded input for this batch element
    # wdw_ref: (3, K, C)                depthwise kernels for q / k / v
    # bdw_ref: (3, C)                   depthwise biases
    # wpw_ref: (3, C, I)                pointwise weights
    # bpw_ref: (3, I)                   pointwise biases
    # out_ref: (1, tile_n, 3*I)         q | k | v concatenated along lanes
    tile_n = out_ref.shape[1]
    K = wdw_ref.shape[1]

    # Small weights: load once per grid step (resident in VMEM); hoist casts.
    wdw = wdw_ref[...].astype(jnp.float32)   # (3, K, C)
    bdw = bdw_ref[...].astype(jnp.float32)   # (3, C)
    wpw = wpw_ref[...]                       # (3, C, I)  kept in param dtype
    bpw = bpw_ref[...].astype(jnp.float32)   # (3, I)

    nt = pl.program_id(1)
    start = pl.multiple_of(nt * tile_n, tile_n)   # tile_n is a multiple of 8
    # One aligned load + cast of the halo window; the K shifted views below are
    # value slices of this vreg-resident block (no extra VMEM traffic).
    xw = x_ref[0, pl.ds(start, tile_n + K - 1), :].astype(jnp.float32)

    outs = []
    for p in range(3):  # static unroll over q / k / v
        # Depthwise conv1d (stride 1) as K shifted multiply-adds, f32 accum.
        acc = xw[0:tile_n, :] * wdw[p, 0][None, :]
        for k in range(1, K):
            acc = acc + xw[k:k + tile_n, :] * wdw[p, k][None, :]
        acc = jnp.maximum(acc + bdw[p][None, :], 0.0)          # bias + ReLU
        # Pointwise 1x1 conv == MXU matmul; operands in parameter dtype
        # (bf16 stays bf16), accumulate in f32.
        y = jnp.dot(acc.astype(wpw.dtype), wpw[p],
                    preferred_element_type=jnp.float32)
        outs.append(y + bpw[p][None, :])

    # Single lane-dense store of all three projections.
    out_ref[0] = jnp.concatenate(outs, axis=-1).astype(out_ref.dtype)


def conv_projection_pallas(x, w_dw, b_dw, w_pw, b_pw, *, heads, kernel_size,
                           pad, tile_n=None):
    """x: (B, N, C) channels-last.  Returns (q, k, v), each (B, heads, N, dim_head).

    w_dw: (3, C, K)          depthwise weights (torch Conv1d groups=C, squeezed)
    b_dw: (3, C)
    w_pw: (3, inner_dim, C)  pointwise weights (torch Conv1d kernel_size=1, squeezed)
    b_pw: (3, inner_dim)
    """
    B, N, C = x.shape
    inner_dim = w_pw.shape[1]
    K = kernel_size
    if 2 * pad != K - 1:
        # TODO(synk): q_stride/k_stride/v_stride != 1 (non-default) not implemented.
        raise NotImplementedError("only stride=1 with 'same' padding is supported")
    # TODO(synk): attn_kv != x (cross-attention input) not implemented; the
    # module's default path (attn_kv=None -> attn_kv=x) is what this computes.

    # Sequence tiling: multiple of 8 sublanes, target <= 512 rows per tile.
    if tile_n is None:
        tile_n = min(512, ((N + 7) // 8) * 8)
    tile_n = max(8, (tile_n // 8) * 8)
    n_tiles = pl.cdiv(N, tile_n)
    n_total = n_tiles * tile_n

    # Channels-last padded input: left halo `pad`, right halo `pad` plus tail
    # padding up to a full tile multiple.  Shape (B, n_total + K - 1, C).
    x_pad = jnp.pad(x, ((0, 0), (pad, pad + (n_total - N)), (0, 0)))

    wdw_k = jnp.transpose(w_dw, (0, 2, 1))   # (3, K, C)
    bdw_k = b_dw                             # (3, C)
    wpw_k = jnp.transpose(w_pw, (0, 2, 1))   # (3, C, inner_dim)
    bpw_k = b_pw                             # (3, inner_dim)

    out = pl.pallas_call(
        _qkv_fused_kernel,
        out_shape=jax.ShapeDtypeStruct((B, n_total, 3 * inner_dim), x.dtype),
        grid_spec=pltpu.PrefetchScalarGridSpec(
            num_scalar_prefetch=0,
            grid=(B, n_tiles),
            in_specs=[
                # x: whole padded sequence per batch element; block index is
                # constant across the inner n-tile axis -> DMA'd once per batch.
                pl.BlockSpec((1, n_total + K - 1, C), lambda b, nt: (b, 0, 0)),
                # Weights/biases: untiled, resident for the whole kernel.
                pl.BlockSpec((3, K, C), lambda b, nt: (0, 0, 0)),
                pl.BlockSpec((3, C), lambda b, nt: (0, 0)),
                pl.BlockSpec((3, C, inner_dim), lambda b, nt: (0, 0, 0)),
                pl.BlockSpec((3, inner_dim), lambda b, nt: (0, 0)),
            ],
            out_specs=pl.BlockSpec((1, tile_n, 3 * inner_dim),
                                   lambda b, nt: (b, nt, 0)),
        ),
        compiler_params=pltpu.CompilerParams(
            dimension_semantics=("parallel", "arbitrary"),
            vmem_limit_bytes=48 * 1024 * 1024),
    )(x_pad, wdw_k, bdw_k, wpw_k, bpw_k)

    out = out[:, :N, :]                       # drop tail-padding rows
    dim_head = inner_dim // heads

    def to_bhnd(y):  # (B, N, inner_dim) -> (B, heads, N, dim_head)
        return jnp.transpose(y.reshape(B, N, heads, dim_head), (0, 2, 1, 3))

    q = to_bhnd(out[:, :, 0:inner_dim])
    k = to_bhnd(out[:, :, inner_dim:2 * inner_dim])
    v = to_bhnd(out[:, :, 2 * inner_dim:3 * inner_dim])
    return q, k, v


def _reference(x, w_dw, b_dw, w_pw, b_pw, *, heads, kernel_size, pad):
    """Plain-JAX reference mirroring the PyTorch forward (NCL layout internally)."""
    B, N, C = x.shape
    inner_dim = w_pw.shape[1]
    dim_head = inner_dim // heads
    x_ncl = jnp.transpose(x, (0, 2, 1))                       # b c n
    x_p = jnp.pad(x_ncl, ((0, 0), (0, 0), (pad, pad)))

    outs = []
    for p in range(3):
        # depthwise
        dw = sum(x_p[:, :, k:k + N] * w_dw[p][:, k][None, :, None]
                 for k in range(kernel_size))
        dw = dw + b_dw[p][None, :, None]
        dw = jnp.maximum(dw, 0.0)
        # pointwise
        pw = jnp.einsum('bcn,oc->bon', dw, w_pw[p]) + b_pw[p][None, :, None]
        # rearrange 'b (h d) n -> b h n d'
        outs.append(jnp.transpose(pw.reshape(B, heads, dim_head, N), (0, 1, 3, 2)))
    return tuple(outs)


if __name__ == "__main__":
    def run_case(B, N, dim, heads, dim_head, tile_n):
        inner_dim = heads * dim_head
        kernel_size, q_stride = 3, 1
        pad = (kernel_size - q_stride) // 2

        key = jax.random.PRNGKey(0)
        kx, kw1, kb1, kw2, kb2 = jax.random.split(key, 5)
        x = jax.random.normal(kx, (B, N, dim), dtype=jnp.float32)          # b n c
        # Depthwise Conv1d weights: torch shape (dim, 1, K) per projection -> (3, dim, K)
        w_dw = 0.1 * jax.random.normal(kw1, (3, dim, kernel_size), dtype=jnp.float32)
        b_dw = 0.1 * jax.random.normal(kb1, (3, dim), dtype=jnp.float32)
        # Pointwise Conv1d weights: torch shape (inner_dim, dim, 1) -> (3, inner_dim, dim)
        w_pw = 0.1 * jax.random.normal(kw2, (3, inner_dim, dim), dtype=jnp.float32)
        b_pw = 0.1 * jax.random.normal(kb2, (3, inner_dim), dtype=jnp.float32)

        q, k, v = conv_projection_pallas(
            x, w_dw, b_dw, w_pw, b_pw, heads=heads, kernel_size=kernel_size,
            pad=pad, tile_n=tile_n)
        jax.block_until_ready((q, k, v))

        q_ref, k_ref, v_ref = _reference(
            x, w_dw, b_dw, w_pw, b_pw, heads=heads, kernel_size=kernel_size, pad=pad)

        assert q.shape == (B, heads, N, dim_head)
        assert k.shape == (B, heads, N, dim_head)
        assert v.shape == (B, heads, N, dim_head)
        for a, b_ in ((q, q_ref), (k, k_ref), (v, v_ref)):
            assert jnp.allclose(a, b_, atol=1e-4, rtol=1e-4), "mismatch vs reference"

    # Halo handling across two N tiles (N divisible by tile_n).
    run_case(B=2, N=16, dim=8, heads=2, dim_head=4, tile_n=8)
    # Ragged tail: N not a multiple of tile_n (tail rows padded, then sliced off).
    run_case(B=2, N=20, dim=8, heads=2, dim_head=4, tile_n=8)

    print("KERNEL_OK")
</pallas_src>

<mosaic_0001>
module attributes {stable_mosaic.version = 11 : i64} {
  func.func @_qkv_fused_kernel(%arg0: i32, %arg1: i32, %arg2: memref<1x18x8xf32, #tpu.memory_space<vmem>>, %arg3: memref<3x3x8xf32, #tpu.memory_space<vmem>>, %arg4: memref<3x8xf32, #tpu.memory_space<vmem>>, %arg5: memref<3x8x8xf32, #tpu.memory_space<vmem>>, %arg6: memref<3x8xf32, #tpu.memory_space<vmem>>, %arg7: memref<1x8x24xf32, #tpu.memory_space<vmem>>) attributes {dimension_semantics = [#tpu.dimension_semantics<parallel>, #tpu.dimension_semantics<arbitrary>], iteration_bounds = array<i64: 2, 2>, scalar_prefetch = 0 : i64, scratch_operands = 0 : i64, tpu.core_type = #tpu.core_type<tc>, window_params = [{transform_indices = @transform_0, window_bounds = array<i64: 1, 18, 8>}, {pipeline_mode = #tpu.pipeline_mode<synchronous>, transform_indices = @transform_1, window_bounds = array<i64: 3, 3, 8>}, {pipeline_mode = #tpu.pipeline_mode<synchronous>, transform_indices = @transform_2, window_bounds = array<i64: 3, 8>}, {pipeline_mode = #tpu.pipeline_mode<synchronous>, transform_indices = @transform_3, window_bounds = array<i64: 3, 8, 8>}, {pipeline_mode = #tpu.pipeline_mode<synchronous>, transform_indices = @transform_4, window_bounds = array<i64: 3, 8>}, {transform_indices = @transform_5, window_bounds = array<i64: 1, 8, 24>}]} {
    %c0 = arith.constant 0 : index
    %c0_0 = arith.constant 0 : index
    %c0_1 = arith.constant 0 : index
    %0 = vector.load %arg3[%c0, %c0_0, %c0_1] : memref<3x3x8xf32, #tpu.memory_space<vmem>>, vector<3x3x8xf32>
    %c0_2 = arith.constant 0 : index
    %c0_3 = arith.constant 0 : index
    %1 = vector.load %arg4[%c0_2, %c0_3] : memref<3x8xf32, #tpu.memory_space<vmem>>, vector<3x8xf32>
    %c0_4 = arith.constant 0 : index
    %c0_5 = arith.constant 0 : index
    %c0_6 = arith.constant 0 : index
    %2 = vector.load %arg5[%c0_4, %c0_5, %c0_6] : memref<3x8x8xf32, #tpu.memory_space<vmem>>, vector<3x8x8xf32>
    %c0_7 = arith.constant 0 : index
    %c0_8 = arith.constant 0 : index
    %3 = vector.load %arg6[%c0_7, %c0_8] : memref<3x8xf32, #tpu.memory_space<vmem>>, vector<3x8xf32>
    %c8_i32 = arith.constant 8 : i32
    %4 = arith.muli %arg1, %c8_i32 : i32
    %5 = tpu.assume_multiple %4, 8 : i32
    %c0_9 = arith.constant 0 : index
    %6 = arith.index_cast %5 : i32 to index
    %c0_10 = arith.constant 0 : index
    %7 = vector.load %arg2[%c0_9, %6, %c0_10] : memref<1x18x8xf32, #tpu.memory_space<vmem>>, vector<1x10x8xf32>
    %8 = vector.shape_cast %7 : vector<1x10x8xf32> to vector<10x8xf32>
    %9 = vector.extract_strided_slice %8 {offsets = [0, 0], sizes = [8, 8], strides = [1, 1]} : vector<10x8xf32> to vector<8x8xf32>
    %10 = vector.extract_strided_slice %0 {offsets = [0, 0, 0], sizes = [1, 1, 8], strides = [1, 1, 1]} : vector<3x3x8xf32> to vector<1x1x8xf32>
    %11 = vector.shape_cast %10 : vector<1x1x8xf32> to vector<8xf32>
    %12 = vector.shape_cast %11 : vector<8xf32> to vector<1x8xf32>
    %13 = vector.broadcast %12 : vector<1x8xf32> to vector<8x8xf32>
    %14 = arith.mulf %9, %13 : vector<8x8xf32>
    %15 = vector.extract_strided_slice %8 {offsets = [1, 0], sizes = [8, 8], strides = [1, 1]} : vector<10x8xf32> to vector<8x8xf32>
    %16 = vector.extract_strided_slice %0 {offsets = [0, 1, 0], sizes = [1, 1, 8], strides = [1, 1, 1]} : vector<3x3x8xf32> to vector<1x1x8xf32>
    %17 = vector.shape_cast %16 : vector<1x1x8xf32> to vector<8xf32>
    %18 = vector.shape_cast %17 : vector<8xf32> to vector<1x8xf32>
    %19 = vector.broadcast %18 : vector<1x8xf32> to vector<8x8xf32>
    %20 = arith.mulf %15, %19 : vector<8x8xf32>
    %21 = arith.addf %14, %20 : vector<8x8xf32>
    %22 = vector.extract_strided_slice %8 {offsets = [2, 0], sizes = [8, 8], strides = [1, 1]} : vector<10x8xf32> to vector<8x8xf32>
    %23 = vector.extract_strided_slice %0 {offsets = [0, 2, 0], sizes = [1, 1, 8], strides = [1, 1, 1]} : vector<3x3x8xf32> to vector<1x1x8xf32>
    %24 = vector.shape_cast %23 : vector<1x1x8xf32> to vector<8xf32>
    %25 = vector.shape_cast %24 : vector<8xf32> to vector<1x8xf32>
    %26 = vector.broadcast %25 : vector<1x8xf32> to vector<8x8xf32>
    %27 = arith.mulf %22, %26 : vector<8x8xf32>
    %28 = arith.addf %21, %27 : vector<8x8xf32>
    %29 = vector.extract_strided_slice %1 {offsets = [0, 0], sizes = [1, 8], strides = [1, 1]} : vector<3x8xf32> to vector<1x8xf32>
    %30 = vector.shape_cast %29 : vector<1x8xf32> to vector<8xf32>
    %31 = vector.shape_cast %30 : vector<8xf32> to vector<1x8xf32>
    %32 = vector.broadcast %31 : vector<1x8xf32> to vector<8x8xf32>
    %33 = arith.addf %28, %32 : vector<8x8xf32>
    %cst = arith.constant 0.000000e+00 : f32
    %34 = vector.broadcast %cst : f32 to vector<8x8xf32>
    %35 = arith.maximumf %33, %34 : vector<8x8xf32>
    %36 = vector.extract_strided_slice %2 {offsets = [0, 0, 0], sizes = [1, 8, 8], strides = [1, 1, 1]} : vector<3x8x8xf32> to vector<1x8x8xf32>
    %37 = vector.shape_cast %36 : vector<1x8x8xf32> to vector<8x8xf32>
    %cst_11 = arith.constant dense<0.000000e+00> : vector<8x8xf32>
    %38 = tpu.matmul %35, %37, %cst_11 {dimension_numbers = #tpu.dot_dimension_numbers<[1], [0], [0], [1], [0, 0, 1, 1], [], []>} : vector<8x8xf32>, vector<8x8xf32>, vector<8x8xf32> -> vector<8x8xf32>
    %39 = vector.extract_strided_slice %3 {offsets = [0, 0], sizes = [1, 8], strides = [1, 1]} : vector<3x8xf32> to vector<1x8xf32>
    %40 = vector.shape_cast %39 : vector<1x8xf32> to vector<8xf32>
    %41 = vector.shape_cast %40 : vector<8xf32> to vector<1x8xf32>
    %42 = vector.broadcast %41 : vector<1x8xf32> to vector<8x8xf32>
    %43 = arith.addf %38, %42 : vector<8x8xf32>
    %44 = vector.extract_strided_slice %8 {offsets = [0, 0], sizes = [8, 8], strides = [1, 1]} : vector<10x8xf32> to vector<8x8xf32>
    %45 = vector.extract_strided_slice %0 {offsets = [1, 0, 0], sizes = [1, 1, 8], strides = [1, 1, 1]} : vector<3x3x8xf32> to vector<1x1x8xf32>
    %46 = vector.shape_cast %45 : vector<1x1x8xf32> to vector<8xf32>
    %47 = vector.shape_cast %46 : vector<8xf32> to vector<1x8xf32>
    %48 = vector.broadcast %47 : vector<1x8xf32> to vector<8x8xf32>
    %49 = arith.mulf %44, %48 : vector<8x8xf32>
    %50 = vector.extract_strided_slice %8 {offsets = [1, 0], sizes = [8, 8], strides = [1, 1]} : vector<10x8xf32> to vector<8x8xf32>
    %51 = vector.extract_strided_slice %0 {offsets = [1, 1, 0], sizes = [1, 1, 8], strides = [1, 1, 1]} : vector<3x3x8xf32> to vector<1x1x8xf32>
    %52 = vector.shape_cast %51 : vector<1x1x8xf32> to vector<8xf32>
    %53 = vector.shape_cast %52 : vector<8xf32> to vector<1x8xf32>
    %54 = vector.broadcast %53 : vector<1x8xf32> to vector<8x8xf32>
    %55 = arith.mulf %50, %54 : vector<8x8xf32>
    %56 = arith.addf %49, %55 : vector<8x8xf32>
    %57 = vector.extract_strided_slice %8 {offsets = [2, 0], sizes = [8, 8], strides = [1, 1]} : vector<10x8xf32> to vector<8x8xf32>
    %58 = vector.extract_strided_slice %0 {offsets = [1, 2, 0], sizes = [1, 1, 8], strides = [1, 1, 1]} : vector<3x3x8xf32> to vector<1x1x8xf32>
    %59 = vector.shape_cast %58 : vector<1x1x8xf32> to vector<8xf32>
    %60 = vector.shape_cast %59 : vector<8xf32> to vector<1x8xf32>
    %61 = vector.broadcast %60 : vector<1x8xf32> to vector<8x8xf32>
    %62 = arith.mulf %57, %61 : vector<8x8xf32>
    %63 = arith.addf %56, %62 : vector<8x8xf32>
    %64 = vector.extract_strided_slice %1 {offsets = [1, 0], sizes = [1, 8], strides = [1, 1]} : vector<3x8xf32> to vector<1x8xf32>
    %65 = vector.shape_cast %64 : vector<1x8xf32> to vector<8xf32>
    %66 = vector.shape_cast %65 : vector<8xf32> to vector<1x8xf32>
    %67 = vector.broadcast %66 : vector<1x8xf32> to vector<8x8xf32>
    %68 = arith.addf %63, %67 : vector<8x8xf32>
    %cst_12 = arith.constant 0.000000e+00 : f32
    %69 = vector.broadcast %cst_12 : f32 to vector<8x8xf32>
    %70 = arith.maximumf %68, %69 : vector<8x8xf32>
    %71 = vector.extract_strided_slice %2 {offsets = [1, 0, 0], sizes = [1, 8, 8], strides = [1, 1, 1]} : vector<3x8x8xf32> to vector<1x8x8xf32>
    %72 = vector.shape_cast %71 : vector<1x8x8xf32> to vector<8x8xf32>
    %cst_13 = arith.constant dense<0.000000e+00> : vector<8x8xf32>
    %73 = tpu.matmul %70, %72, %cst_13 {dimension_numbers = #tpu.dot_dimension_numbers<[1], [0], [0], [1], [0, 0, 1, 1], [], []>} : vector<8x8xf32>, vector<8x8xf32>, vector<8x8xf32> -> vector<8x8xf32>
    %74 = vector.extract_strided_slice %3 {offsets = [1, 0], sizes = [1, 8], strides = [1, 1]} : vector<3x8xf32> to vector<1x8xf32>
    %75 = vector.shape_cast %74 : vector<1x8xf32> to vector<8xf32>
    %76 = vector.shape_cast %75 : vector<8xf32> to vector<1x8xf32>
    %77 = vector.broadcast %76 : vector<1x8xf32> to vector<8x8xf32>
    %78 = arith.addf %73, %77 : vector<8x8xf32>
    %79 = vector.extract_strided_slice %8 {offsets = [0, 0], sizes = [8, 8], strides = [1, 1]} : vector<10x8xf32> to vector<8x8xf32>
    %80 = vector.extract_strided_slice %0 {offsets = [2, 0, 0], sizes = [1, 1, 8], strides = [1, 1, 1]} : vector<3x3x8xf32> to vector<1x1x8xf32>
    %81 = vector.shape_cast %80 : vector<1x1x8xf32> to vector<8xf32>
    %82 = vector.shape_cast %81 : vector<8xf32> to vector<1x8xf32>
    %83 = vector.broadcast %82 : vector<1x8xf32> to vector<8x8xf32>
    %84 = arith.mulf %79, %83 : vector<8x8xf32>
    %85 = vector.extract_strided_slice %8 {offsets = [1, 0], sizes = [8, 8], strides = [1, 1]} : vector<10x8xf32> to vector<8x8xf32>
    %86 = vector.extract_strided_slice %0 {offsets = [2, 1, 0], sizes = [1, 1, 8], strides = [1, 1, 1]} : vector<3x3x8xf32> to vector<1x1x8xf32>
    %87 = vector.shape_cast %86 : vector<1x1x8xf32> to vector<8xf32>
    %88 = vector.shape_cast %87 : vector<8xf32> to vector<1x8xf32>
    %89 = vector.broadcast %88 : vector<1x8xf32> to vector<8x8xf32>
    %90 = arith.mulf %85, %89 : vector<8x8xf32>
    %91 = arith.addf %84, %90 : vector<8x8xf32>
    %92 = vector.extract_strided_slice %8 {offsets = [2, 0], sizes = [8, 8], strides = [1, 1]} : vector<10x8xf32> to vector<8x8xf32>
    %93 = vector.extract_strided_slice %0 {offsets = [2, 2, 0], sizes = [1, 1, 8], strides = [1, 1, 1]} : vector<3x3x8xf32> to vector<1x1x8xf32>
    %94 = vector.shape_cast %93 : vector<1x1x8xf32> to vector<8xf32>
    %95 = vector.shape_cast %94 : vector<8xf32> to vector<1x8xf32>
    %96 = vector.broadcast %95 : vector<1x8xf32> to vector<8x8xf32>
    %97 = arith.mulf %92, %96 : vector<8x8xf32>
    %98 = arith.addf %91, %97 : vector<8x8xf32>
    %99 = vector.extract_strided_slice %1 {offsets = [2, 0], sizes = [1, 8], strides = [1, 1]} : vector<3x8xf32> to vector<1x8xf32>
    %100 = vector.shape_cast %99 : vector<1x8xf32> to vector<8xf32>
    %101 = vector.shape_cast %100 : vector<8xf32> to vector<1x8xf32>
    %102 = vector.broadcast %101 : vector<1x8xf32> to vector<8x8xf32>
    %103 = arith.addf %98, %102 : vector<8x8xf32>
    %cst_14 = arith.constant 0.000000e+00 : f32
    %104 = vector.broadcast %cst_14 : f32 to vector<8x8xf32>
    %105 = arith.maximumf %103, %104 : vector<8x8xf32>
    %106 = vector.extract_strided_slice %2 {offsets = [2, 0, 0], sizes = [1, 8, 8], strides = [1, 1, 1]} : vector<3x8x8xf32> to vector<1x8x8xf32>
    %107 = vector.shape_cast %106 : vector<1x8x8xf32> to vector<8x8xf32>
    %cst_15 = arith.constant dense<0.000000e+00> : vector<8x8xf32>
    %108 = tpu.matmul %105, %107, %cst_15 {dimension_numbers = #tpu.dot_dimension_numbers<[1], [0], [0], [1], [0, 0, 1, 1], [], []>} : vector<8x8xf32>, vector<8x8xf32>, vector<8x8xf32> -> vector<8x8xf32>
    %109 = vector.extract_strided_slice %3 {offsets = [2, 0], sizes = [1, 8], strides = [1, 1]} : vector<3x8xf32> to vector<1x8xf32>
    %110 = vector.shape_cast %109 : vector<1x8xf32> to vector<8xf32>
    %111 = vector.shape_cast %110 : vector<8xf32> to vector<1x8xf32>
    %112 = vector.broadcast %111 : vector<1x8xf32> to vector<8x8xf32>
    %113 = arith.addf %108, %112 : vector<8x8xf32>
    %114 = tpu.concatenate %43, %78, %113 in 1 : vector<8x8xf32>, vector<8x8xf32>, vector<8x8xf32> -> vector<8x24xf32>
    %c0_16 = arith.constant 0 : index
    %c0_17 = arith.constant 0 : index
    %c0_18 = arith.constant 0 : index
    %115 = vector.load %arg7[%c0_16, %c0_17, %c0_18] : memref<1x8x24xf32, #tpu.memory_space<vmem>>, vector<1x8x24xf32>
    %116 = vector.shape_cast %115 : vector<1x8x24xf32> to vector<8x24xf32>
    %117 = vector.shape_cast %114 : vector<8x24xf32> to vector<1x8x24xf32>
    tpu.vector_store %arg7[%c0_16, %c0_17, %c0_18], %117 {strides = array<i32>} : memref<1x8x24xf32, #tpu.memory_space<vmem>>, vector<1x8x24xf32>,
    return
  }
  func.func @transform_0(%arg0: i32, %arg1: i32) -> (i32, i32, i32) {
    %c0_i32 = arith.constant 0 : i32
    %c0_i32_0 = arith.constant 0 : i32
    %c0_i32_1 = arith.constant 0 : i32
    return %arg0, %c0_i32, %c0_i32_0 : i32, i32, i32
  }
  func.func @transform_1(%arg0: i32, %arg1: i32) -> (i32, i32, i32) {
    %c0_i32 = arith.constant 0 : i32
    %c0_i32_0 = arith.constant 0 : i32
    %c0_i32_1 = arith.constant 0 : i32
    %c0_i32_2 = arith.constant 0 : i32
    return %c0_i32, %c0_i32_0, %c0_i32_1 : i32, i32, i32
  }
  func.func @transform_2(%arg0: i32, %arg1: i32) -> (i32, i32) {
    %c0_i32 = arith.constant 0 : i32
    %c0_i32_0 = arith.constant 0 : i32
    %c0_i32_1 = arith.constant 0 : i32
    return %c0_i32, %c0_i32_0 : i32, i32
  }
  func.func @transform_3(%arg0: i32, %arg1: i32) -> (i32, i32, i32) {
    %c0_i32 = arith.constant 0 : i32
    %c0_i32_0 = arith.constant 0 : i32
    %c0_i32_1 = arith.constant 0 : i32
    %c0_i32_2 = arith.constant 0 : i32
    return %c0_i32, %c0_i32_0, %c0_i32_1 : i32, i32, i32
  }
  func.func @transform_4(%arg0: i32, %arg1: i32) -> (i32, i32) {
    %c0_i32 = arith.constant 0 : i32
    %c0_i32_0 = arith.constant 0 : i32
    %c0_i32_1 = arith.constant 0 : i32
    return %c0_i32, %c0_i32_0 : i32, i32
  }
  func.func @transform_5(%arg0: i32, %arg1: i32) -> (i32, i32, i32) {
    %c0_i32 = arith.constant 0 : i32
    %c0_i32_0 = arith.constant 0 : i32
    return %arg0, %arg1, %c0_i32 : i32, i32, i32
  }
}

</mosaic_0001>

<bundles_post_ra>
// kernel: tpu_custom_call.1
= control target key start
LH: loop header
LB: loop body
LE: loop exit
PB: predicated region body
PF: predicated region fallthrough
CT: control target
= control target key end

     0   :  { %10 = vsyncpa [#allocation3], 0  ;;  %s882_s0 = inlined_call_operand.vmem [shape: f32[2,18,8], index: 0, kind: input, shape index: {}]   ;;  %s883_s1 = inlined_call_operand.vmem [shape: f32[3,3,8], index: 1, kind: input, shape index: {}]   ;;  %s884_s2 = inlined_call_operand.vmem [shape: f32[3,8], index: 2, kind: input, shape index: {}]   ;;  %s885_s3 = inlined_call_operand.vmem [shape: f32[3,8,8], index: 3, kind: input, shape index: {}]   ;;  %s886_s4 = inlined_call_operand.vmem [shape: f32[3,8], index: 4, kind: input, shape index: {}]   ;;  %s887_s5 = inlined_call_operand.hbm [shape: f32[2,16,24], index: 5, kind: output, shape index: {}]  }
   0x1   :  { %12 = vsyncpa [#allocation3 + $0x1], 0  ;;  %s722_s18 = smov 0   ;;  %s724_s19 = smov 0  }
   0x2   :  { %s726_s20 = smov 0   ;;  %s728_s21 = smov 0  }
   0x3   :  { %s730_s22 = smov 0   ;;  %s732_s23 = smov 0  }
   0x4   :  { %s734_s24 = smov 0   ;;  %s736_s25 = smov 0  }
   0x5 LB: > { %s504_s26 = sadd.s32 4294967295, %s688_s25   ;;  %s505_s27 = sadd.s32 4294967294, %s688_s25   ;;  %s688_s25 = sphi %s736_s25, %s18_s25   ;;  %s684_s24 = sphi %s734_s24, %s896_s24   ;;  %s680_s23 = sphi %s732_s23, %s895_s23   ;;  %s676_s22 = sphi %s730_s22, %s894_s22   ;;  %s672_s21 = sphi %s728_s21, %s893_s21   ;;  %s668_s20 = sphi %s726_s20, %s892_s20   ;;  %s664_s19 = sphi %s724_s19, %s891_s19   ;;  %s660_s18 = sphi %s722_s18, %s890_s18  }
   0x6   : > { %s27_s28 = sadd.s32 1, %s680_s23  ;;  %s30_s29 = sadd.s32 1, %s684_s24 }
   0x7   : > { %p28_p0 = scmp.ge.s32.totalorder %s27_s28, 2  ;;  %p159_p1 = scmp.ne.s32.totalorder %s668_s20, %s664_s19 }
   0x8   : > { %p160_p2 = scmp.eq.s32.totalorder %s504_s26, 3  ;;  %p165_p5 = scmp.ne.s32.totalorder %s664_s19, %s660_s18 }
   0x9   : > { %s898_s28 = smov (%p28_p0, %s27_s28), 0  ;;  %s900_s29 = smov (!%p28_p0, %s30_s29), %s684_s24 }
   0xa   : > { %s145_s30 = ssub.s32 %s680_s23, %s898_s28  ;;  %p773_p3 = por %p160_p2, %p159_p1 }
   0xb   : > { %p32_p4 = scmp.ge.s32.totalorder %s900_s29, 2  ;;  %p166_p6 = scmp.eq.s32.totalorder %s505_s27, 3 }
   0xc   : > { %p508_p7 = scmp.ge.s32.totalorder %s688_s25, 1  ;;  %p204_p9 = scmp.lt.s32.totalorder %s688_s25, 5 }
   0xd   : > { %s902_s29 = smov (%p32_p4, %s900_s29), 0  ;;  %p782_p8 = por %p166_p6, %p165_p5 }
   0xe   : > { %s144_s8 = ssub.s32 %s684_s24, %s902_s29  ;;  %s149_s9 = sadd.s32 1, %s668_s20 }
   0xf   : > { %s146_s10 = sor.u32 %s145_s30, %s144_s8  ;;  %p205_p10 = pnand %p508_p7, %p204_p9 }
  0x10   : > { %p147_p11 = scmp.eq.s32.totalorder %s146_s10, 0  ;;  %p232_p12 = scmp.lt.s32.totalorder (!%p205_p10), %s676_s22, 1 }
  0x11   : > { %208 = sbr.rel (%p205_p10) target bundleno = 297 (0x129), region = 40  ;;  %s511_s14 = sshll.u32 (!%p205_p10), %s672_s21, 3 }
  0x12   : > { %s791_s11 = scalar_select %p147_p11, %s668_s20, %s149_s9  }
  0x13   : > { %s691_s12 = smov (!%p205_p10), 16   ;;  %s516_s13 = sshll.u32 (!%p205_p10), %s676_s22, 1 }
  0x14   : > { %s423_s15 = sadd.s32 (!%p205_p10), %s672_s21, %s516_s13 }
  0x15   : > { %s517_s26 = sshll.u32 (!%p205_p10), %s423_s15, 3 }
  0x16   : > { %v242_v0 = vld [vmem:[%s885_s3 + $0x8] sm:$0xff]  ;;  %v243_v1 = vld [vmem:[%s885_s3 + $0x10] sm:$0xff]  ;;  %s233_s16 = scalar_select %p232_p12, %s676_s22, 1  ;;  %v238_v2 = vld [vmem:[%s883_s1 + $0x4] sm:$0x7]  ;;  %vm256_vm0 = vcmask 1046528  }
  0x17   : > { %345 = vmatpush.msra.mxu1 %v242_v0  ;;  %394 = vmatpush.msra.mxu2 %v243_v1  ;;  %v239_v3 = vld [vmem:[%s883_s1 + $0x8] sm:$0x7]  ;;  %v241_v4 = vld [vmem:[%s885_s3] sm:$0xff]  ;;  %v301_v6 = vperm.slane %v238_v2, 0  ;;  %v303_v7 = vperm.slane %v238_v2, 1  ;;  %v313_v8 = vperm.slane %v238_v2, 2 }
  0x18   : > { %s520_s10 = smul.u32 24, %s233_s16  ;;  %v813_v5 = vld [vmem:[%s884_s2] sm:$0x7]  ;;  %296 = vmatpush.msra.mxu0 %v241_v4  ;;  %v350_v10 = vperm.slane %v239_v3, 0  ;;  %v352_v11 = vperm.slane %v239_v3, 1  ;;  %vm267_vm1 = vcmask 1045504  }
  0x19   : > { %v237_v9 = vld [vmem:[%s883_s1] sm:$0x7]  ;;  %v323_v12 = vperm.slane %v813_v5, 1  ;;  %v362_v13 = vperm.slane %v239_v3, 2  ;;  %v372_v37 = vperm.slane %v813_v5, 2  ;;  %vm277_vm2 = vcmask 64512  }
  0x1a   : > { %s236_s30 = scalar_lea.vmem %s882_s0, %s520_s10  ;;  %v249_v16 = vperm.slane %v237_v9, 0  ;;  %v251_v17 = vperm.slane %v237_v9, 1  ;;  %v262_v18 = vperm.slane %v237_v9, 2  ;;  %v273_v61 = vperm.slane %v813_v5, 0  ;;  %v244_v2 = vld [vmem:[%s886_s4] sm:$0x7] }
  0x1b   : > { %s246_s16 = scalar_lea.vmem %s236_s30, %s511_s14  ;;  %v326_v3 = vperm.slane %v244_v2, 1  ;;  %s690_s10 = smov 8   ;;  %v276_v9 = vperm.slane %v244_v2, 0  ;;  %vm408_vm3 = vcmask 130048   ;;  %vm410_vm4 = vcmask 195584  }
  0x1c   : > { %v247_v14 = vld [vmem:[%s246_s16] sm:$0xff]  ;;  %v248_v15 = vld [vmem:[%s246_s16 + $0x8] sm:$0x3]  ;;  %s229_s14 = sand.u32 1, %s664_s19   ;;  %s425_s16 = scalar_lea.hbm %s887_s5, %s517_s26 }
  0x1d   : > { %v302_v19 = vmul.f32 %v301_v6, %v247_v14  ;;  %v304_v20 = vmul.f32 %v303_v7, %v247_v14  ;;  %v305_v21 = vmul.f32 %v303_v7, %v248_v15  ;;  %v314_v22 = vmul.f32 %v313_v8, %v247_v14  ;;  %s509_s17 = sshll.u32 %s229_s14, 3  ;;  %s413_s21 = scalar_lea.sflag [#allocation3], %s229_s14 }
  0x1e   : > { %v315_v23 = vmul.f32 %v313_v8, %v248_v15  ;;  %v351_v24 = vmul.f32 %v350_v10, %v247_v14  ;;  %v353_v25 = vmul.f32 %v352_v11, %v247_v14  ;;  %v354_v26 = vmul.f32 %v352_v11, %v248_v15  ;;  %s231_s8 = scalar_lea.vmem [#allocation2], %s509_s17  ;;  %s614_s17 = scalar_lea.hbm %s887_s5, 32 }
  0x1f   : > { %v308_v27 = vrot.slane %v304_v20, 1  ;;  %v309_v28 = vrot.slane %v305_v21, 1  ;;  %v318_v29 = vrot.slane %v314_v22, 2  ;;  %v363_v30 = vmul.f32 %v362_v13, %v247_v14  ;;  %s427_s9 = sshll.u32 %s231_s8, 4  ;;  %s428_s9 = int_to_ptr.vmem [resolvable:$true] %s427_s9 }
  0x20   : > { %v319_v31 = vrot.slane %v315_v23, 2  ;;  %v357_v32 = vrot.slane %v353_v25, 1  ;;  %v358_v33 = vrot.slane %v354_v26, 1  ;;  %v364_v34 = vmul.f32 %v362_v13, %v248_v15 }
  0x21   : > { %v310_v35 = vsel %vm256_vm0, %v308_v27, %v309_v28  ;;  %v367_v36 = vrot.slane %v363_v30, 2  ;;  %v252_v38 = vmul.f32 %v251_v17, %v247_v14  ;;  %v253_v44 = vmul.f32 %v251_v17, %v248_v15 }
  0x22   : > { %v312_v39 = vadd.f32 %v310_v35, %v302_v19  ;;  %v320_v40 = vsel %vm267_vm1, %v318_v29, %v319_v31  ;;  %v359_v41 = vsel %vm256_vm0, %v357_v32, %v358_v33  ;;  %v368_v42 = vrot.slane %v364_v34, 2 }
  0x23   : > { %v361_v43 = vadd.f32 %v359_v41, %v351_v24  ;;  %v257_v45 = vrot.slane %v252_v38, 1  ;;  %v263_v46 = vmul.f32 %v262_v18, %v247_v14  ;;  %v250_v49 = vmul.f32 %v249_v16, %v247_v14 }
  0x24   : > { %v322_v47 = vadd.f32 %v320_v40, %v312_v39  ;;  %v369_v48 = vsel %vm267_vm1, %v367_v36, %v368_v42  ;;  %v264_v50 = vmul.f32 %v262_v18, %v248_v15  ;;  %v258_v52 = vrot.slane %v253_v44, 1 }
  0x25   : > { %v371_v51 = vadd.f32 %v369_v48, %v361_v43  ;;  %v268_v53 = vrot.slane %v263_v46, 2  ;;  %v375_v6 = vperm.slane %v244_v2, 2 }
  0x26   : > { %v324_v54 = vadd.f32 %v323_v12, %v322_v47  ;;  %v269_v55 = vrot.slane %v264_v50, 2  ;;  %v259_v57 = vsel %vm256_vm0, %v257_v45, %v258_v52 }
  0x27   : > { %v373_v56 = vadd.f32 %v372_v37, %v371_v51  ;;  %v261_v59 = vadd.f32 %v259_v57, %v250_v49 }
  0x28   : > { %v325_v58 = vmax.f32 %v324_v54, 0.0  ;;  %v270_v60 = vsel %vm267_vm1, %v268_v53, %v269_v55 }
  0x29   : > { %v374_v62 = vmax.f32 %v373_v56, 0.0  ;;  %v272_v63 = vadd.f32 %v270_v60, %v261_v59 }
  0x2a   : > { %513 = vmatmul.msk.f32.vlgmr.msra.gmra.mxu1 %vm277_vm2, %v325_v58 }
  0x2b   : > { %514 = vmatmul.msk.f32.vlgmr.msra.gmra.mxu2 %vm277_vm2, %v374_v62  ;;  %v274_v0 = vadd.f32 %v273_v61, %v272_v63 }
  0x2d   : > { %v275_v1 = vmax.f32 %v274_v0, 0.0 }
  0x2f   : > { %512 = vmatmul.msk.f32.vlgmr.msra.gmra.mxu0 %vm277_vm2, %v275_v1 }
  0xa7   : > { %v347_v4 = vpop.f32.mrf.mxu1 }
  0xa8   : > { %v348_v5 = vadd.f32 %v347_v4, %v326_v3 }
  0xaa   : > { %400 = vrot.lane.b32.xlu0 %v348_v5, %s690_s10  ;;  %s429_s10 = sshll.u32 %s425_s16, 4  ;;  %s430_s10 = int_to_ptr.hbm [resolvable:$true] %s429_s10 }
  0xab   : > { %s608_s22 = sshra.s32 %s430_s10, 4  ;;  %s609_s22 = int_to_ptr.hbm [resolvable:$true] %s608_s22 }
  0xac   : > { %v298_v11 = vpop.f32.mrf.mxu0  ;;  %p615_p2 = scmp.lt.s32.totalorder %s609_s22, %s887_s5 }
  0xad   : > { %v299_v12 = vadd.f32 %v298_v11, %v276_v9 }
  0xae   : > { %v396_v7 = vpop.f32.mrf.mxu2 }
  0xaf   : > { %v397_v8 = vadd.f32 %v396_v7, %v375_v6 }
  0xb2   : > { %404 = vrot.lane.b32.xlu0 %v397_v8, %s691_s12  ;;  %s610_s12 = scalar_lea.hbm %s609_s22, 8 }
  0xb3   : > { %p611_p13 = scmp.ne.s32.totalorder %s609_s22, %s610_s12  ;;  %p616_p4 = scmp.lt.s32.totalorder %s614_s17, %s610_s12 }
  0xb5   : > { %p612_p0 = pnand %p611_p13, %p773_p3  ;;  %p617_p5 = por %p616_p4, %p615_p2 }
  0xb7   : > { %p613_p1 = pneg %p612_p0 }
  0xb9   : > { %p618_p6 = pnand %p617_p5, %p613_p1 }
 0x11c   : > { %v401_v10 = vpop.permute.xlu0 %400 }
 0x11d   : > { %v407_v13 = vsel %vm277_vm2, %v299_v12, %v401_v10 }
 0x124   : > { %v405_v14 = vpop.permute.xlu0 %404 }
 0x125   : > { %v409_v15 = vsel %vm408_vm3, %v407_v13, %v405_v14 }
 0x126   : > { %411 = vst.msk [vmem:[%s231_s8] sm:$0xff] %vm410_vm4, %v409_v15 }
 0x127   : > { %621 = shalt.err (!%p618_p6)
}
 0x128   : > { %521 = dma.vmem_to_hbm [thread:$0]  (%p773_p3), %s428_s9, 128, %s430_s10, %s413_s21  }
 0x129 PF: > { %p527_p7 = scmp.ge.s32.totalorder %s688_s25, 2  ;;  %s441_s14 = sand.u32 1, %s660_s18  }
 0x12a   : > { %s442_s30 = scalar_lea.sflag [#allocation3], %s441_s14 }
 0x12b   : > { %p524_p9 = pnand %p527_p7, %p782_p8 }
 0x12d   : > { %p525_p10 = pneg %p524_p9 }
 0x12f   : > { %655 = dma.done.wait (%p525_p10), %s442_s30, 128  }
 0x130   : > { %657 = vsyncadd (%p525_p10), %s442_s30, 4294967168  ;;  %s18_s25 = sadd.s32 1, %s688_s25   ;;  %s890_s18 = smov %s664_s19 }
 0x131   : > { %p15_p11 = scmp.ge.s32.totalorder %s18_s25, 6   ;;  %s891_s19 = smov %s668_s20 }
 0x132   : > { %s892_s20 = smov %s791_s11  ;;  %s893_s21 = smov %s680_s23 }
 0x133   : > { %s894_s22 = smov %s684_s24  ;;  %s895_s23 = smov %s898_s28 }
 0x134   : > { %s896_s24 = smov %s902_s29  ;;  %17 = sbr.rel (!%p15_p11) target bundleno = 5 (0x5), region = 76 }
 0x139   :  { %448 = vsyncpa [#allocation3], 1 }
 0x13a   :  { %450 = vsyncpa [#allocation3 + $0x1], 1 }

</bundles_post_ra>
